<compile_context>
chip_gen: v5e
topology: v5e:2x2
jax: 0.10.0
libtpu: 0.0.40
codegen_flags: <defaults>
</compile_context>

<pallas_src>
import jax
import jax.numpy as jnp
from jax.experimental import pallas as pl
from jax.experimental.pallas import tpu as pltpu

_LANE = 128


def _make_glu_kernel(nb, dim, compute_dtype, fused):
    """Build the kernel body for an (nb, dim, ts) activation block."""
    if fused:
        # Single fused matmul with W_cat = [Wl; Wr]; requires dim % 8 == 0 so
        # the sublane split of y into halves is a free view (no VMEM copy).
        def kernel(x_ref, w_ref, b_ref, o_ref):
            w = w_ref[...]                              # (2*dim, dim)
            b = b_ref[...]                              # (2*dim, 1) f32
            for n in range(nb):                         # nb is small & static
                x = x_ref[n]                            # (dim, ts)
                if compute_dtype is not None:
                    x = x.astype(compute_dtype)         # in-kernel cast (no HBM pass)
                y = jnp.dot(w, x, preferred_element_type=jnp.float32) + b
                lhs = y[:dim, :]
                rhs = y[dim:, :]
                gate = 0.5 * jnp.tanh(0.5 * rhs) + 0.5  # exact sigmoid, 1 EUP op
                o_ref[n] = (lhs * gate).astype(o_ref.dtype)
        return kernel

    def kernel(x_ref, wl_ref, wr_ref, bl_ref, br_ref, o_ref):
        wl = wl_ref[...]                                # (dim, dim)
        wr = wr_ref[...]
        bl = bl_ref[...]                                # (dim, 1) f32
        br = br_ref[...]
        for n in range(nb):
            x = x_ref[n]                                # (dim, ts)
            if compute_dtype is not None:
                x = x.astype(compute_dtype)
            lhs = jnp.dot(wl, x, preferred_element_type=jnp.float32) + bl
            rhs = jnp.dot(wr, x, preferred_element_type=jnp.float32) + br
            gate = 0.5 * jnp.tanh(0.5 * rhs) + 0.5
            o_ref[n] = (lhs * gate).astype(o_ref.dtype)
    return kernel


def _vmem_budget_bytes():
    """Physical VMEM minus headroom, generation-aware (v7x 64 MiB, v5e/v6e 128)."""
    try:
        phys = int(pltpu.get_tpu_info().vmem_capacity_bytes)
    except Exception:
        phys = 64 << 20                                 # conservative (v7x-sized)
    return int(min(phys - (16 << 20), 100 << 20))


def _choose_tiling(N, dim, hw, ix, io, w_bytes, budget):
    """Pick (nb, ts): stream ~1 MiB of HBM per grid step, stay in VMEM budget."""
    target = 1 << 20
    col_bytes = dim * (ix + io)                         # HBM bytes per lane column/image

    if hw <= _LANE:
        ts = hw                                         # block == full spatial extent
    else:
        full_chunks = hw // _LANE                       # keep ts <= hw; ragged edge via grid
        ts_chunks = min(full_chunks, max(1, pl.cdiv(target, col_bytes * _LANE)))
        ts = ts_chunks * _LANE

    def step_vmem(nb, t):
        # double-buffered in/out tiles + f32 intermediates (y, gate, product)
        return nb * dim * t * (2 * (ix + io) + 16)

    while ts > _LANE and step_vmem(1, ts) + w_bytes > budget:
        ts -= _LANE

    nb = 1
    if ts >= hw:                                        # one step already spans all of H*W
        while (nb < min(N, 8)
               and nb * dim * ts * (ix + io) < target
               and step_vmem(nb + 1, ts) + w_bytes <= budget):
            nb += 1
    return nb, ts, step_vmem(nb, ts)


def glu_pallas(x_nchw, w, b, *, compute_dtype=jnp.bfloat16):
    """GLU forward (PyTorch Conv2d(dim, 2*dim, 1) gated linear unit, NCHW).

    x_nchw: (N, dim, H, W) activations.
    w:      (2*dim, dim) 1x1-conv weight (kernel dims squeezed), rows = [Wl; Wr].
    b:      (2*dim,) bias.
    compute_dtype: MXU input dtype (default bf16 -> native MXU; x is cast
                   *inside* the kernel so no extra HBM pass). None keeps the
                   matmul in the original dtype (exact f32 path).
                   Accumulation, bias, sigmoid and gating are always f32.
    """
    N, dim, H, W = x_nchw.shape
    assert w.shape == (2 * dim, dim) and b.shape == (2 * dim,)
    out_dtype = x_nchw.dtype
    hw = H * W

    x3d = x_nchw.reshape(N, dim, hw)                    # free reshape, NCHW-native

    w_op = w if compute_dtype is None else w.astype(compute_dtype)
    ix = jnp.dtype(x3d.dtype).itemsize
    io = jnp.dtype(out_dtype).itemsize
    iw = jnp.dtype(w_op.dtype).itemsize
    w_bytes = 2 * dim * dim * iw + 2 * dim * 4          # resident weight + f32 bias
    # TODO(synk): row-tile W over the 2*dim axis when even the bf16 weight exceeds
    # ~1/3 of the VMEM budget (dim >~ 3000 on v7x); not needed for typical GLU dims.

    budget = _vmem_budget_bytes()
    nb, ts, step_bytes = _choose_tiling(N, dim, hw, ix, io, w_bytes, budget)

    grid = (pl.cdiv(N, nb), pl.cdiv(hw, ts))
    x_spec = pl.BlockSpec((nb, dim, ts), lambda n, s: (n, 0, s))
    o_spec = pl.BlockSpec((nb, dim, ts), lambda n, s: (n, 0, s))
    resident = pl.BlockSpec(memory_space=pltpu.MemorySpace.VMEM)

    fused = (dim % 8 == 0)
    kernel = _make_glu_kernel(nb, dim, compute_dtype, fused)

    if fused:
        operands = (w_op, b.reshape(2 * dim, 1).astype(jnp.float32))
        in_specs = [x_spec, resident, resident]
    else:
        operands = (w_op[:dim], w_op[dim:],
                    b[:dim].reshape(dim, 1).astype(jnp.float32),
                    b[dim:].reshape(dim, 1).astype(jnp.float32))
        in_specs = [x_spec, resident, resident, resident, resident]

    vmem_limit = int(min(budget, max(32 << 20, step_bytes + w_bytes + (8 << 20))))

    out3d = pl.pallas_call(
        kernel,
        out_shape=jax.ShapeDtypeStruct((N, dim, hw), out_dtype),
        grid=grid,
        in_specs=in_specs,
        out_specs=o_spec,
        compiler_params=pltpu.CompilerParams(
            dimension_semantics=("parallel", "parallel"),
            vmem_limit_bytes=vmem_limit,
        ),
    )(x3d, *operands)

    return out3d.reshape(N, dim, H, W)


def glu_reference(x_nchw, w, b):
    """Pure-JAX reference matching the PyTorch forward (NCHW)."""
    N, dim, H, W = x_nchw.shape
    y = jnp.einsum('oc,nchw->nohw', w, x_nchw,
                   precision=jax.lax.Precision.HIGHEST) + b[None, :, None, None]
    lhs, rhs = y[:, :dim], y[:, dim:]
    return lhs * jax.nn.sigmoid(rhs)


if __name__ == "__main__":
    key = jax.random.PRNGKey(0)
    k_x, k_w, k_b = jax.random.split(key, 3)

    N, dim, H, W = 2, 4, 16, 16

    # Deterministic parameter init mimicking PyTorch Conv2d default
    # (uniform in +/- 1/sqrt(fan_in), fan_in = dim * 1 * 1).
    bound = 1.0 / (dim ** 0.5)
    w = jax.random.uniform(k_w, (2 * dim, dim), jnp.float32, -bound, bound)
    b = jax.random.uniform(k_b, (2 * dim,), jnp.float32, -bound, bound)
    x = jax.random.normal(k_x, (N, dim, H, W), jnp.float32)

    ref = glu_reference(x, w, b)

    # Exact f32 path (dim=4 exercises the split [Wl | Wr] kernel).
    out_f32 = jax.block_until_ready(glu_pallas(x, w, b, compute_dtype=None))
    assert out_f32.shape == (N, dim, H, W)
    assert jnp.allclose(out_f32, ref, atol=1e-4, rtol=1e-4), "f32 path mismatch"

    # Default fast path: bf16 MXU inputs, f32 accumulation / bias / sigmoid.
    out_bf16 = jax.block_until_ready(glu_pallas(x, w, b))
    assert out_bf16.shape == (N, dim, H, W)
    assert jnp.allclose(out_bf16, ref, atol=3e-2, rtol=3e-2), "bf16 path mismatch"

    # Fused-weight path (dim % 8 == 0), exact f32.
    dim2 = 8
    w2 = jax.random.uniform(k_w, (2 * dim2, dim2), jnp.float32, -0.35, 0.35)
    b2 = jax.random.uniform(k_b, (2 * dim2,), jnp.float32, -0.35, 0.35)
    x2 = jax.random.normal(k_x, (1, dim2, 16, 16), jnp.float32)
    out2 = jax.block_until_ready(glu_pallas(x2, w2, b2, compute_dtype=None))
    assert jnp.allclose(out2, glu_reference(x2, w2, b2), atol=1e-4, rtol=1e-4), \
        "fused path mismatch"

    print("KERNEL_OK")
</pallas_src>

<mosaic_0001>
module attributes {stable_mosaic.version = 11 : i64} {
  func.func @kernel(%arg0: i32, %arg1: i32, %arg2: memref<2x4x256xf32, #tpu.memory_space<vmem>>, %arg3: memref<4x4xf32, #tpu.memory_space<vmem>>, %arg4: memref<4x4xf32, #tpu.memory_space<vmem>>, %arg5: memref<4x1xf32, #tpu.memory_space<vmem>>, %arg6: memref<4x1xf32, #tpu.memory_space<vmem>>, %arg7: memref<2x4x256xf32, #tpu.memory_space<vmem>>) attributes {dimension_semantics = [#tpu.dimension_semantics<parallel>, #tpu.dimension_semantics<parallel>], iteration_bounds = array<i64: 1, 1>, scalar_prefetch = 0 : i64, scratch_operands = 0 : i64, tpu.core_type = #tpu.core_type<tc>, window_params = [{transform_indices = @transform_0, window_bounds = array<i64: 2, 4, 256>}, {pipeline_mode = #tpu.pipeline_mode<synchronous>, transform_indices = @transform_1, window_bounds = array<i64: 4, 4>}, {pipeline_mode = #tpu.pipeline_mode<synchronous>, transform_indices = @transform_2, window_bounds = array<i64: 4, 4>}, {pipeline_mode = #tpu.pipeline_mode<synchronous>, transform_indices = @transform_3, window_bounds = array<i64: 4, 1>}, {pipeline_mode = #tpu.pipeline_mode<synchronous>, transform_indices = @transform_4, window_bounds = array<i64: 4, 1>}, {transform_indices = @transform_5, window_bounds = array<i64: 2, 4, 256>}]} {
    %c0 = arith.constant 0 : index
    %c0_0 = arith.constant 0 : index
    %0 = vector.load %arg3[%c0, %c0_0] : memref<4x4xf32, #tpu.memory_space<vmem>>, vector<4x4xf32>
    %c0_1 = arith.constant 0 : index
    %c0_2 = arith.constant 0 : index
    %1 = vector.load %arg4[%c0_1, %c0_2] : memref<4x4xf32, #tpu.memory_space<vmem>>, vector<4x4xf32>
    %c0_3 = arith.constant 0 : index
    %c0_4 = arith.constant 0 : index
    %2 = vector.load %arg5[%c0_3, %c0_4] : memref<4x1xf32, #tpu.memory_space<vmem>>, vector<4x1xf32>
    %c0_5 = arith.constant 0 : index
    %c0_6 = arith.constant 0 : index
    %3 = vector.load %arg6[%c0_5, %c0_6] : memref<4x1xf32, #tpu.memory_space<vmem>>, vector<4x1xf32>
    %c0_7 = arith.constant 0 : index
    %c0_8 = arith.constant 0 : index
    %c0_9 = arith.constant 0 : index
    %4 = vector.load %arg2[%c0_7, %c0_8, %c0_9] : memref<2x4x256xf32, #tpu.memory_space<vmem>>, vector<1x4x256xf32>
    %5 = vector.shape_cast %4 : vector<1x4x256xf32> to vector<4x256xf32>
    %cst = arith.constant dense<0.000000e+00> : vector<4x256xf32>
    %6 = tpu.matmul %0, %5, %cst {dimension_numbers = #tpu.dot_dimension_numbers<[1], [0], [0], [1], [0, 0, 1, 1], [], []>} : vector<4x4xf32>, vector<4x256xf32>, vector<4x256xf32> -> vector<4x256xf32>
    %7 = vector.broadcast %2 : vector<4x1xf32> to vector<4x256xf32>
    %8 = arith.addf %6, %7 : vector<4x256xf32>
    %cst_10 = arith.constant dense<0.000000e+00> : vector<4x256xf32>
    %9 = tpu.matmul %1, %5, %cst_10 {dimension_numbers = #tpu.dot_dimension_numbers<[1], [0], [0], [1], [0, 0, 1, 1], [], []>} : vector<4x4xf32>, vector<4x256xf32>, vector<4x256xf32> -> vector<4x256xf32>
    %10 = vector.broadcast %3 : vector<4x1xf32> to vector<4x256xf32>
    %11 = arith.addf %9, %10 : vector<4x256xf32>
    %cst_11 = arith.constant 5.000000e-01 : f32
    %12 = vector.broadcast %cst_11 : f32 to vector<4x256xf32>
    %13 = arith.mulf %12, %11 : vector<4x256xf32>
    %14 = math.tanh %13 : vector<4x256xf32>
    %cst_12 = arith.constant 5.000000e-01 : f32
    %15 = vector.broadcast %cst_12 : f32 to vector<4x256xf32>
    %16 = arith.mulf %15, %14 : vector<4x256xf32>
    %cst_13 = arith.constant 5.000000e-01 : f32
    %17 = vector.broadcast %cst_13 : f32 to vector<4x256xf32>
    %18 = arith.addf %16, %17 : vector<4x256xf32>
    %19 = arith.mulf %8, %18 : vector<4x256xf32>
    %c0_14 = arith.constant 0 : index
    %c0_15 = arith.constant 0 : index
    %c0_16 = arith.constant 0 : index
    %20 = vector.load %arg7[%c0_14, %c0_15, %c0_16] : memref<2x4x256xf32, #tpu.memory_space<vmem>>, vector<1x4x256xf32>
    %21 = vector.shape_cast %20 : vector<1x4x256xf32> to vector<4x256xf32>
    %22 = vector.shape_cast %19 : vector<4x256xf32> to vector<1x4x256xf32>
    tpu.vector_store %arg7[%c0_14, %c0_15, %c0_16], %22 {strides = array<i32>} : memref<2x4x256xf32, #tpu.memory_space<vmem>>, vector<1x4x256xf32>,
    %c1 = arith.constant 1 : index
    %c0_17 = arith.constant 0 : index
    %c0_18 = arith.constant 0 : index
    %23 = vector.load %arg2[%c1, %c0_17, %c0_18] : memref<2x4x256xf32, #tpu.memory_space<vmem>>, vector<1x4x256xf32>
    %24 = vector.shape_cast %23 : vector<1x4x256xf32> to vector<4x256xf32>
    %cst_19 = arith.constant dense<0.000000e+00> : vector<4x256xf32>
    %25 = tpu.matmul %0, %24, %cst_19 {dimension_numbers = #tpu.dot_dimension_numbers<[1], [0], [0], [1], [0, 0, 1, 1], [], []>} : vector<4x4xf32>, vector<4x256xf32>, vector<4x256xf32> -> vector<4x256xf32>
    %26 = vector.broadcast %2 : vector<4x1xf32> to vector<4x256xf32>
    %27 = arith.addf %25, %26 : vector<4x256xf32>
    %cst_20 = arith.constant dense<0.000000e+00> : vector<4x256xf32>
    %28 = tpu.matmul %1, %24, %cst_20 {dimension_numbers = #tpu.dot_dimension_numbers<[1], [0], [0], [1], [0, 0, 1, 1], [], []>} : vector<4x4xf32>, vector<4x256xf32>, vector<4x256xf32> -> vector<4x256xf32>
    %29 = vector.broadcast %3 : vector<4x1xf32> to vector<4x256xf32>
    %30 = arith.addf %28, %29 : vector<4x256xf32>
    %cst_21 = arith.constant 5.000000e-01 : f32
    %31 = vector.broadcast %cst_21 : f32 to vector<4x256xf32>
    %32 = arith.mulf %31, %30 : vector<4x256xf32>
    %33 = math.tanh %32 : vector<4x256xf32>
    %cst_22 = arith.constant 5.000000e-01 : f32
    %34 = vector.broadcast %cst_22 : f32 to vector<4x256xf32>
    %35 = arith.mulf %34, %33 : vector<4x256xf32>
    %cst_23 = arith.constant 5.000000e-01 : f32
    %36 = vector.broadcast %cst_23 : f32 to vector<4x256xf32>
    %37 = arith.addf %35, %36 : vector<4x256xf32>
    %38 = arith.mulf %27, %37 : vector<4x256xf32>
    %c1_24 = arith.constant 1 : index
    %c0_25 = arith.constant 0 : index
    %c0_26 = arith.constant 0 : index
    %39 = vector.load %arg7[%c1_24, %c0_25, %c0_26] : memref<2x4x256xf32, #tpu.memory_space<vmem>>, vector<1x4x256xf32>
    %40 = vector.shape_cast %39 : vector<1x4x256xf32> to vector<4x256xf32>
    %41 = vector.shape_cast %38 : vector<4x256xf32> to vector<1x4x256xf32>
    tpu.vector_store %arg7[%c1_24, %c0_25, %c0_26], %41 {strides = array<i32>} : memref<2x4x256xf32, #tpu.memory_space<vmem>>, vector<1x4x256xf32>,
    return
  }
  func.func @transform_0(%arg0: i32, %arg1: i32) -> (i32, i32, i32) {
    %c0_i32 = arith.constant 0 : i32
    %c0_i32_0 = arith.constant 0 : i32
    return %arg0, %c0_i32, %arg1 : i32, i32, i32
  }
  func.func @transform_1(%arg0: i32, %arg1: i32) -> (i32, i32) {
    %c0_i32 = arith.constant 0 : i32
    %c0_i32_0 = arith.constant 0 : i32
    %c0_i32_1 = arith.constant 0 : i32
    return %c0_i32, %c0_i32_0 : i32, i32
  }
  func.func @transform_2(%arg0: i32, %arg1: i32) -> (i32, i32) {
    %c0_i32 = arith.constant 0 : i32
    %c0_i32_0 = arith.constant 0 : i32
    %c0_i32_1 = arith.constant 0 : i32
    return %c0_i32, %c0_i32_0 : i32, i32
  }
  func.func @transform_3(%arg0: i32, %arg1: i32) -> (i32, i32) {
    %c0_i32 = arith.constant 0 : i32
    %c0_i32_0 = arith.constant 0 : i32
    %c0_i32_1 = arith.constant 0 : i32
    return %c0_i32, %c0_i32_0 : i32, i32
  }
  func.func @transform_4(%arg0: i32, %arg1: i32) -> (i32, i32) {
    %c0_i32 = arith.constant 0 : i32
    %c0_i32_0 = arith.constant 0 : i32
    %c0_i32_1 = arith.constant 0 : i32
    return %c0_i32, %c0_i32_0 : i32, i32
  }
  func.func @transform_5(%arg0: i32, %arg1: i32) -> (i32, i32, i32) {
    %c0_i32 = arith.constant 0 : i32
    %c0_i32_0 = arith.constant 0 : i32
    return %arg0, %c0_i32, %arg1 : i32, i32, i32
  }
}

</mosaic_0001>

<bundles_post_ra>
// kernel: tpu_custom_call.1
= control target key start
LH: loop header
LB: loop body
LE: loop exit
PB: predicated region body
PF: predicated region fallthrough
CT: control target
= control target key end

     0   :  { %10 = vsyncpa [#allocation3], 0  ;;  %s463_s0 = inlined_call_operand.hbm [shape: f32[2,4,256], index: 0, kind: input, shape index: {}]   ;;  %s464_s1 = inlined_call_operand.vmem [shape: f32[4,4], index: 1, kind: input, shape index: {}]   ;;  %s465_s2 = inlined_call_operand.vmem [shape: f32[4,4], index: 2, kind: input, shape index: {}]   ;;  %s466_s3 = inlined_call_operand.vmem [shape: f32[4,1], index: 3, kind: input, shape index: {}]   ;;  %s467_s4 = inlined_call_operand.vmem [shape: f32[4,1], index: 4, kind: input, shape index: {}]   ;;  %s468_s5 = inlined_call_operand.hbm [shape: f32[2,4,256], index: 5, kind: output, shape index: {}]  }
   0x1   :  { %11 = vsyncpa [#allocation4], 0  ;;  %s16_s20 = sshll.u32 %s463_s0, 4  ;;  %s386_s21 = smov [#allocation2]   ;;  %s17_s20 = int_to_ptr.hbm [resolvable:$true] %s16_s20 }
   0x2   :  { %s18_s22 = sshll.u32 %s386_s21, 4  ;;  %s387_s23 = smov 128   ;;  %s19_s22 = int_to_ptr.vmem [resolvable:$true] %s18_s22 }
   0x3   :  { %s388_s24 = smov 8  }
   0x4   :  { %24 = dma.hbm_to_vmem [thread:$0]  %s17_s20, 256, %s19_s22, [#allocation3], %s387_s23, %s387_s23, %s388_s24  }
   0x5   :  { %382 = dma.done.wait [#allocation3], 256  }
   0x6   :  { %383 = vsyncadd [#allocation3], 4294967040  ;;  %v41_v0 = vld [vmem:[#allocation2] sm:$0xff]  ;;  %v40_v1 = vld [vmem:[%s467_s4] sm:$0xf]  ;;  %v389_v2 = vmov 0  }
   0x7   :  { %48 = vst [vmem:[#allocation1] ss:$2 sm:$0xff] %v41_v0  ;;  %325 = vset.pattern.permute.xlu0 %v389_v2  ;;  %vm55_vm0 = vcmask 1043456   ;;  %v37_v3 = vld [vmem:[%s464_s1] sm:$0xf]  ;;  %vm51_vm1 = vcmask 31744  }
   0x8   :  { %102 = vperm.xlu0 %325, %v40_v1   ;;  %v39_v6 = vld [vmem:[%s466_s3] sm:$0xf]  ;;  %v172_v7 = vld [vmem:[#allocation2 + $0x8] sm:$0xff]  ;;  %s291_s7 = sshll.u32 %s468_s5, 4  ;;  %s292_s7 = int_to_ptr.hbm [resolvable:$true] %s291_s7 }
   0x9   :  { %v38_v8 = vld [vmem:[%s465_s2] sm:$0xf]  ;;  %s390_s2 = smov [#allocation5]  }
   0xa   :  { %s289_s3 = sshll.u32 %s390_s2, 4  ;;  %s290_s3 = int_to_ptr.vmem [resolvable:$true] %s289_s3 }
   0xe   :  { %v49_v4 = vld.sshfl [vmem:[#allocation1] sm:$0xff pattern:$0x75316420]  ;;  %v50_v5 = vld.sshfl [vmem:[#allocation1 + $0x8] sm:$0xff pattern:$0x75316420] }
   0xf   :  { %105 = vst [vmem:[#allocation1] ss:$2 sm:$0xff] %v41_v0  ;;  %304 = vmatpush.msk.msra.mxu0 %vm55_vm0, %v49_v4  ;;  %306 = vmatpush.msk.msra.mxu1 %vm55_vm0, %v50_v5 }
  0x10   :  { %305 = vmatmul.msk.f32.vlgmr.msra.gmra.mxu0 %vm51_vm1, %v37_v3  ;;  %307 = vmatmul.msk.f32.vlgmr.msra.gmra.mxu1 %vm51_vm1, %v37_v3 }
  0x11   :  { %44 = vperm.xlu0 %325, %v39_v6  }
  0x16   :  { %v106_v9 = vld.sshfl [vmem:[#allocation1] sm:$0xff pattern:$0x75316420]  ;;  %v107_v10 = vld.sshfl [vmem:[#allocation1 + $0x8] sm:$0xff pattern:$0x75316420] }
  0x17   :  { %308 = vmatpush.msk.msra.mxu2 %vm55_vm0, %v106_v9  ;;  %310 = vmatpush.msk.msra.mxu3 %vm55_vm0, %v107_v10  ;;  %174 = vst [vmem:[#allocation1] ss:$2 sm:$0xff] %v172_v7 }
  0x18   :  { %309 = vmatmul.msk.f32.vlgmr.msra.gmra.mxu2 %vm51_vm1, %v38_v8  ;;  %311 = vmatmul.msk.f32.vlgmr.msra.gmra.mxu3 %vm51_vm1, %v38_v8 }
  0x1e   :  { %v175_v11 = vld.sshfl [vmem:[#allocation1] sm:$0xff pattern:$0x75316420]  ;;  %v176_v12 = vld.sshfl [vmem:[#allocation1 + $0x8] sm:$0xff pattern:$0x75316420] }
  0x1f   :  { %221 = vst [vmem:[#allocation1] ss:$2 sm:$0xff] %v172_v7  ;;  %312 = vmatpush.msk.msrb.mxu0 %vm55_vm0, %v175_v11  ;;  %314 = vmatpush.msk.msrb.mxu1 %vm55_vm0, %v176_v12 }
  0x20   :  { %313 = vmatmul.msk.f32.vlgmr.msrb.gmra.mxu0 %vm51_vm1, %v37_v3  ;;  %315 = vmatmul.msk.f32.vlgmr.msrb.gmra.mxu1 %vm51_vm1, %v37_v3 }
  0x26   :  { %v222_v13 = vld.sshfl [vmem:[#allocation1] sm:$0xff pattern:$0x75316420]  ;;  %v223_v14 = vld.sshfl [vmem:[#allocation1 + $0x8] sm:$0xff pattern:$0x75316420] }
  0x27   :  { %316 = vmatpush.msk.msrb.mxu2 %vm55_vm0, %v222_v13  ;;  %318 = vmatpush.msk.msrb.mxu3 %vm55_vm0, %v223_v14 }
  0x28   :  { %317 = vmatmul.msk.f32.vlgmr.msrb.gmra.mxu2 %vm51_vm1, %v38_v8  ;;  %319 = vmatmul.msk.f32.vlgmr.msrb.gmra.mxu3 %vm51_vm1, %v38_v8 }
  0x7a   :  { %v103_v15 = vpop.permute.xlu0 %102 }
  0x83   :  { %v45_v22 = vpop.permute.xlu0 %44 }
  0x8d   :  { %v77_v26 = vpop.f32.mrf.mxu0  ;;  %v97_v27 = vpop.f32.mrf.mxu1 }
  0x8e   :  { %v78_v29 = vadd.f32 %v77_v26, %v45_v22  ;;  %v98_v30 = vadd.f32 %v97_v27, %v45_v22 }
  0x9b   :  { %v132_v16 = vpop.f32.mrf.mxu2  ;;  %v152_v17 = vpop.f32.mrf.mxu3 }
  0x9c   :  { %v133_v18 = vadd.f32 %v132_v16, %v103_v15  ;;  %v153_v19 = vadd.f32 %v152_v17, %v103_v15 }
  0x9d   :  { %v218_v46 = vpop.f32.mrf.mxu1  ;;  %v198_v48 = vpop.f32.mrf.mxu0 }
  0x9e   :  { %v155_v20 = vmul.f32 0.5, %v133_v18  ;;  %v156_v21 = vmul.f32 0.5, %v153_v19  ;;  %v219_v51 = vadd.f32 %v218_v46, %v45_v22  ;;  %v199_v52 = vadd.f32 %v198_v48, %v45_v22 }
  0xa0   :  { %326 = vtanh.f32 %v155_v20 }
  0xa1   :  { %328 = vtanh.f32 %v156_v21 }
  0xa6   :  { %v327_v23 = vpop.eup %326 }
  0xa7   :  { %v329_v24 = vpop.eup %328  ;;  %v159_v25 = vmul.f32 0.5, %v327_v23 }
  0xa8   :  { %v160_v28 = vmul.f32 0.5, %v329_v24 }
  0xa9   :  { %v161_v31 = vadd.f32 0.5, %v159_v25 }
  0xaa   :  { %v162_v32 = vadd.f32 0.5, %v160_v28 }
  0xab   :  { %v245_v33 = vpop.f32.mrf.mxu2  ;;  %v265_v34 = vpop.f32.mrf.mxu3  ;;  %v163_v37 = vmul.f32 %v161_v31, %v78_v29 }
  0xac   :  { %v246_v35 = vadd.f32 %v245_v33, %v103_v15  ;;  %v266_v36 = vadd.f32 %v265_v34, %v103_v15  ;;  %v164_v38 = vmul.f32 %v162_v32, %v98_v30 }
  0xae   :  { %v268_v39 = vmul.f32 0.5, %v246_v35  ;;  %v269_v40 = vmul.f32 0.5, %v266_v36  ;;  %v167_v41 = vrot.slane %v164_v38, 4 }
  0xb0   :  { %330 = vtanh.f32 %v268_v39  ;;  %v168_v42 = vsel %vm55_vm0, %v163_v37, %v167_v41 }
  0xb1   :  { %332 = vtanh.f32 %v269_v40  ;;  %170 = vst [vmem:[#allocation5] sm:$0xff] %v168_v42 }
  0xb6   :  { %v331_v43 = vpop.eup %330 }
  0xb7   :  { %v333_v44 = vpop.eup %332  ;;  %v272_v45 = vmul.f32 0.5, %v331_v43 }
  0xb8   :  { %v273_v47 = vmul.f32 0.5, %v333_v44 }
  0xb9   :  { %v274_v49 = vadd.f32 0.5, %v272_v45 }
  0xba   :  { %v275_v50 = vadd.f32 0.5, %v273_v47 }
  0xbb   :  { %v276_v54 = vmul.f32 %v274_v49, %v199_v52 }
  0xbc   :  { %v277_v53 = vmul.f32 %v275_v50, %v219_v51 }
  0xbe   :  { %v280_v55 = vrot.slane %v277_v53, 4 }
  0xc0   :  { %v281_v56 = vsel %vm55_vm0, %v276_v54, %v280_v55 }
  0xc1   :  { %284 = vst [vmem:[#allocation5 + $0x8] sm:$0xff] %v281_v56 }
  0xc2   :  { %297 = dma.vmem_to_hbm [thread:$0]  %s290_s3, 256, %s292_s7, [#allocation4], %s387_s23, %s387_s23, %s388_s24  }
  0xc3   :  { %384 = dma.done.wait [#allocation4], 256  }
  0xc4   :  { %385 = vsyncadd [#allocation4], 4294967040 }
  0xc5   :  { %302 = vsyncpa [#allocation3], 1 }
  0xc6   :  { %303 = vsyncpa [#allocation4], 1 }

</bundles_post_ra>
